<compile_context>
chip_gen: v6e
topology: v6e:2x2x1
jax: 0.10.0
libtpu: 0.0.40
codegen_flags: <defaults>
</compile_context>

<pallas_src>
import jax
import jax.numpy as jnp
from jax.experimental import pallas as pl
from jax.experimental.pallas import tpu as pltpu

IN_DIM, H1, H2, H3, OUT_DIM = 13, 64, 32, 16, 4
LANE = 128
_FLOPS_PER_ROW = 2 * (IN_DIM * H1 + H1 * H2 + H2 * H3 + H3 * OUT_DIM)


def _round_up(n, m):
    return ((n + m - 1) // m) * m


def _num_tensorcores():
    """Best-effort TensorCores-per-chip (2 on v7x, 1 on v5e/v6e). Never raises; falls back to 1."""
    names = ("num_cores", "core_count", "num_tensorcores", "tensorcores_per_chip",
             "cores_per_chip", "num_cores_per_chip")
    for probe in (lambda: pltpu.get_tpu_info(), lambda: jax.devices()[0]):
        try:
            obj = probe()
            for n in names:
                v = getattr(obj, n, None)
                if isinstance(v, int) and v >= 1:
                    return v
        except Exception:
            pass
    return 1


def mlp_kernel(xt_ref, w1t_ref, b1_ref, w2t_ref, b2_ref, w3t_ref, b3_ref,
               w4t_ref, b4_ref, ot_ref):
    """Fused 4-layer MLP, feature-major: every activation is (features, block_b)."""
    cd = w1t_ref.dtype  # compute dtype (bf16 or f32); MXU accumulation is always f32

    xt = xt_ref[...].astype(cd)                                                   # (13, Bb)

    h = jnp.dot(w1t_ref[...], xt, preferred_element_type=jnp.float32) + b1_ref[...]
    h = jnp.maximum(h, 0.0).astype(cd)                                            # (64, Bb)

    h = jnp.dot(w2t_ref[...], h, preferred_element_type=jnp.float32) + b2_ref[...]
    h = jnp.maximum(h, 0.0).astype(cd)                                            # (32, Bb)

    h = jnp.dot(w3t_ref[...], h, preferred_element_type=jnp.float32) + b3_ref[...]
    h = jnp.maximum(h, 0.0).astype(cd)                                            # (16, Bb)

    out_t = jnp.dot(w4t_ref[...], h, preferred_element_type=jnp.float32) + b4_ref[...]
    ot_ref[...] = out_t.astype(ot_ref.dtype)                                      # (4, Bb) lane-dense


def space_weather_net(x, params, *, block_b=4096, compute_dtype=jnp.bfloat16):
    """x: (B, 13). params: w1..w4 as (in, out), b1..b4 as (1, out). Returns (B, 4) f32."""
    B, F = x.shape
    assert F == IN_DIM
    cd = compute_dtype

    # ---- batch tile (multiple of 128 so batch sits lane-dense) ------------------------
    block_b = max(LANE, (min(int(block_b), 4096) // LANE) * LANE)
    block_b = min(block_b, _round_up(B, LANE))
    cores = _num_tensorcores()
    if cores >= 2 and B > LANE:
        # Balance the "parallel" grid axis across TensorCores: step count a multiple of
        # the core count.  Single-TC chips never manufacture extra grid steps.
        steps = max(cores, _round_up(pl.cdiv(B, block_b), cores))
        bal = _round_up(pl.cdiv(B, steps), LANE)
        if pl.cdiv(B, bal) % cores == 0:
            block_b = bal
    grid = (pl.cdiv(B, block_b),)  # ragged last block handled by Pallas (no jnp.pad)

    # ---- operands, feature-major (x transpose+cast fuse into one tiny XLA op) ---------
    xt = x.T.astype(cd)                                         # (13, B)
    w1t = params["w1"].T.astype(cd); b1 = params["b1"].reshape(H1, 1)
    w2t = params["w2"].T.astype(cd); b2 = params["b2"].reshape(H2, 1)
    w3t = params["w3"].T.astype(cd); b3 = params["b3"].reshape(H3, 1)
    w4t = params["w4"].T.astype(cd); b4 = params["b4"].reshape(OUT_DIM, 1)

    def full_spec(arr):
        # Tiny weights/biases: full (untiled) blocks, constant index map -> resident in VMEM.
        return pl.BlockSpec(arr.shape, lambda i: (0, 0))

    in_bytes = IN_DIM * jnp.dtype(cd).itemsize
    cost = pl.CostEstimate(flops=_FLOPS_PER_ROW * B,
                           transcendentals=0,
                           bytes_accessed=B * (in_bytes + OUT_DIM * 4))

    out_t = pl.pallas_call(
        mlp_kernel,
        out_shape=jax.ShapeDtypeStruct((OUT_DIM, B), jnp.float32),
        grid_spec=pltpu.PrefetchScalarGridSpec(
            num_scalar_prefetch=0,
            grid=grid,
            in_specs=[
                pl.BlockSpec((IN_DIM, block_b), lambda i: (0, i)),
                full_spec(w1t), full_spec(b1),
                full_spec(w2t), full_spec(b2),
                full_spec(w3t), full_spec(b3),
                full_spec(w4t), full_spec(b4),
            ],
            out_specs=pl.BlockSpec((OUT_DIM, block_b), lambda i: (0, i)),
        ),
        compiler_params=pltpu.CompilerParams(
            dimension_semantics=("parallel",),
        ),
        cost_estimate=cost,
    )(xt, w1t, b1, w2t, b2, w3t, b3, w4t, b4)

    # Tiny (4, B) -> (B, 4) to preserve the PyTorch module's output layout.
    return out_t.T


def init_params(key):
    """Deterministic init mimicking nn.Linear default (uniform(-1/sqrt(in), 1/sqrt(in)))."""
    dims = [(IN_DIM, H1), (H1, H2), (H2, H3), (H3, OUT_DIM)]
    params = {}
    for idx, (fin, fout) in enumerate(dims, start=1):
        key, kw, kb = jax.random.split(key, 3)
        bound = 1.0 / (fin ** 0.5)
        params[f"w{idx}"] = jax.random.uniform(
            kw, (fin, fout), jnp.float32, minval=-bound, maxval=bound)
        params[f"b{idx}"] = jax.random.uniform(
            kb, (1, fout), jnp.float32, minval=-bound, maxval=bound)
    return params


def reference_forward(x, params, compute_dtype=jnp.float32):
    """Pure-JAX reference with the same dtype policy as the kernel."""
    cd = compute_dtype
    h = x.astype(cd)
    h = jnp.maximum(jnp.dot(h, params["w1"].astype(cd),
                            preferred_element_type=jnp.float32) + params["b1"], 0.0).astype(cd)
    h = jnp.maximum(jnp.dot(h, params["w2"].astype(cd),
                            preferred_element_type=jnp.float32) + params["b2"], 0.0).astype(cd)
    h = jnp.maximum(jnp.dot(h, params["w3"].astype(cd),
                            preferred_element_type=jnp.float32) + params["b3"], 0.0).astype(cd)
    return jnp.dot(h, params["w4"].astype(cd),
                   preferred_element_type=jnp.float32) + params["b4"]


if __name__ == "__main__":
    key = jax.random.PRNGKey(0)
    kx, kp = jax.random.split(key)

    B = 200  # deliberately NOT a multiple of 128 -> exercises the ragged last block
    x = jax.random.normal(kx, (B, IN_DIM), dtype=jnp.float32)
    params = init_params(kp)

    ref_bf16 = reference_forward(x, params, compute_dtype=jnp.bfloat16)
    ref_f32 = reference_forward(x, params, compute_dtype=jnp.float32)
    scale = float(jnp.maximum(jnp.max(jnp.abs(ref_f32)), 1.0))

    # Default path: bf16 compute, f32 accumulation.
    out = jax.block_until_ready(space_weather_net(x, params))
    assert out.shape == (B, OUT_DIM)
    assert float(jnp.max(jnp.abs(out - ref_bf16))) / scale < 2e-2, "mismatch vs bf16-matched reference"
    assert float(jnp.max(jnp.abs(out - ref_f32))) / scale < 5e-2, "mismatch vs f32 reference (loose)"

    # Full-f32 path (tight check of feature-major layout / ragged block / lane-dense store).
    out32 = jax.block_until_ready(space_weather_net(x, params, compute_dtype=jnp.float32))
    assert out32.shape == (B, OUT_DIM)
    assert float(jnp.max(jnp.abs(out32 - ref_f32))) / scale < 5e-3, "mismatch vs f32 reference"

    print("KERNEL_OK")
</pallas_src>

<mosaic_0001>
module attributes {stable_mosaic.version = 11 : i64} {
  func.func @mlp_kernel(%arg0: i32, %arg1: memref<13x256xbf16, #tpu.memory_space<vmem>>, %arg2: memref<64x13xbf16, #tpu.memory_space<vmem>>, %arg3: memref<64x1xf32, #tpu.memory_space<vmem>>, %arg4: memref<32x64xbf16, #tpu.memory_space<vmem>>, %arg5: memref<32x1xf32, #tpu.memory_space<vmem>>, %arg6: memref<16x32xbf16, #tpu.memory_space<vmem>>, %arg7: memref<16x1xf32, #tpu.memory_space<vmem>>, %arg8: memref<4x16xbf16, #tpu.memory_space<vmem>>, %arg9: memref<4x1xf32, #tpu.memory_space<vmem>>, %arg10: memref<4x256xf32, #tpu.memory_space<vmem>>) attributes {dimension_semantics = [#tpu.dimension_semantics<parallel>], iteration_bounds = array<i64: 1>, scalar_prefetch = 0 : i64, scratch_operands = 0 : i64, tpu.core_type = #tpu.core_type<tc>, window_params = [{transform_indices = @transform_0, window_bounds = array<i64: 13, 256>}, {pipeline_mode = #tpu.pipeline_mode<synchronous>, transform_indices = @transform_1, window_bounds = array<i64: 64, 13>}, {pipeline_mode = #tpu.pipeline_mode<synchronous>, transform_indices = @transform_2, window_bounds = array<i64: 64, 1>}, {pipeline_mode = #tpu.pipeline_mode<synchronous>, transform_indices = @transform_3, window_bounds = array<i64: 32, 64>}, {pipeline_mode = #tpu.pipeline_mode<synchronous>, transform_indices = @transform_4, window_bounds = array<i64: 32, 1>}, {pipeline_mode = #tpu.pipeline_mode<synchronous>, transform_indices = @transform_5, window_bounds = array<i64: 16, 32>}, {pipeline_mode = #tpu.pipeline_mode<synchronous>, transform_indices = @transform_6, window_bounds = array<i64: 16, 1>}, {pipeline_mode = #tpu.pipeline_mode<synchronous>, transform_indices = @transform_7, window_bounds = array<i64: 4, 16>}, {pipeline_mode = #tpu.pipeline_mode<synchronous>, transform_indices = @transform_8, window_bounds = array<i64: 4, 1>}, {transform_indices = @transform_9, window_bounds = array<i64: 4, 256>}]} {
    %c0 = arith.constant 0 : index
    %c0_0 = arith.constant 0 : index
    %0 = vector.load %arg1[%c0, %c0_0] : memref<13x256xbf16, #tpu.memory_space<vmem>>, vector<13x256xbf16>
    %c0_1 = arith.constant 0 : index
    %c0_2 = arith.constant 0 : index
    %1 = vector.load %arg2[%c0_1, %c0_2] : memref<64x13xbf16, #tpu.memory_space<vmem>>, vector<64x13xbf16>
    %cst = arith.constant dense<0.000000e+00> : vector<64x256xf32>
    %2 = tpu.matmul %1, %0, %cst {dimension_numbers = #tpu.dot_dimension_numbers<[1], [0], [0], [1], [0, 0, 1, 1], [], []>} : vector<64x13xbf16>, vector<13x256xbf16>, vector<64x256xf32> -> vector<64x256xf32>
    %c0_3 = arith.constant 0 : index
    %c0_4 = arith.constant 0 : index
    %3 = vector.load %arg3[%c0_3, %c0_4] : memref<64x1xf32, #tpu.memory_space<vmem>>, vector<64x1xf32>
    %4 = vector.broadcast %3 : vector<64x1xf32> to vector<64x256xf32>
    %5 = arith.addf %2, %4 : vector<64x256xf32>
    %cst_5 = arith.constant 0.000000e+00 : f32
    %6 = vector.broadcast %cst_5 : f32 to vector<64x256xf32>
    %7 = arith.maximumf %5, %6 : vector<64x256xf32>
    %8 = arith.truncf %7 : vector<64x256xf32> to vector<64x256xbf16>
    %c0_6 = arith.constant 0 : index
    %c0_7 = arith.constant 0 : index
    %9 = vector.load %arg4[%c0_6, %c0_7] : memref<32x64xbf16, #tpu.memory_space<vmem>>, vector<32x64xbf16>
    %cst_8 = arith.constant dense<0.000000e+00> : vector<32x256xf32>
    %10 = tpu.matmul %9, %8, %cst_8 {dimension_numbers = #tpu.dot_dimension_numbers<[1], [0], [0], [1], [0, 0, 1, 1], [], []>} : vector<32x64xbf16>, vector<64x256xbf16>, vector<32x256xf32> -> vector<32x256xf32>
    %c0_9 = arith.constant 0 : index
    %c0_10 = arith.constant 0 : index
    %11 = vector.load %arg5[%c0_9, %c0_10] : memref<32x1xf32, #tpu.memory_space<vmem>>, vector<32x1xf32>
    %12 = vector.broadcast %11 : vector<32x1xf32> to vector<32x256xf32>
    %13 = arith.addf %10, %12 : vector<32x256xf32>
    %cst_11 = arith.constant 0.000000e+00 : f32
    %14 = vector.broadcast %cst_11 : f32 to vector<32x256xf32>
    %15 = arith.maximumf %13, %14 : vector<32x256xf32>
    %16 = arith.truncf %15 : vector<32x256xf32> to vector<32x256xbf16>
    %c0_12 = arith.constant 0 : index
    %c0_13 = arith.constant 0 : index
    %17 = vector.load %arg6[%c0_12, %c0_13] : memref<16x32xbf16, #tpu.memory_space<vmem>>, vector<16x32xbf16>
    %cst_14 = arith.constant dense<0.000000e+00> : vector<16x256xf32>
    %18 = tpu.matmul %17, %16, %cst_14 {dimension_numbers = #tpu.dot_dimension_numbers<[1], [0], [0], [1], [0, 0, 1, 1], [], []>} : vector<16x32xbf16>, vector<32x256xbf16>, vector<16x256xf32> -> vector<16x256xf32>
    %c0_15 = arith.constant 0 : index
    %c0_16 = arith.constant 0 : index
    %19 = vector.load %arg7[%c0_15, %c0_16] : memref<16x1xf32, #tpu.memory_space<vmem>>, vector<16x1xf32>
    %20 = vector.broadcast %19 : vector<16x1xf32> to vector<16x256xf32>
    %21 = arith.addf %18, %20 : vector<16x256xf32>
    %cst_17 = arith.constant 0.000000e+00 : f32
    %22 = vector.broadcast %cst_17 : f32 to vector<16x256xf32>
    %23 = arith.maximumf %21, %22 : vector<16x256xf32>
    %24 = arith.truncf %23 : vector<16x256xf32> to vector<16x256xbf16>
    %c0_18 = arith.constant 0 : index
    %c0_19 = arith.constant 0 : index
    %25 = vector.load %arg8[%c0_18, %c0_19] : memref<4x16xbf16, #tpu.memory_space<vmem>>, vector<4x16xbf16>
    %cst_20 = arith.constant dense<0.000000e+00> : vector<4x256xf32>
    %26 = tpu.matmul %25, %24, %cst_20 {dimension_numbers = #tpu.dot_dimension_numbers<[1], [0], [0], [1], [0, 0, 1, 1], [], []>} : vector<4x16xbf16>, vector<16x256xbf16>, vector<4x256xf32> -> vector<4x256xf32>
    %c0_21 = arith.constant 0 : index
    %c0_22 = arith.constant 0 : index
    %27 = vector.load %arg9[%c0_21, %c0_22] : memref<4x1xf32, #tpu.memory_space<vmem>>, vector<4x1xf32>
    %28 = vector.broadcast %27 : vector<4x1xf32> to vector<4x256xf32>
    %29 = arith.addf %26, %28 : vector<4x256xf32>
    %c0_23 = arith.constant 0 : index
    %c0_24 = arith.constant 0 : index
    %30 = vector.load %arg10[%c0_23, %c0_24] : memref<4x256xf32, #tpu.memory_space<vmem>>, vector<4x256xf32>
    tpu.vector_store %arg10[%c0_23, %c0_24], %29 {strides = array<i32>} : memref<4x256xf32, #tpu.memory_space<vmem>>, vector<4x256xf32>,
    return
  }
  func.func @transform_0(%arg0: i32) -> (i32, i32) {
    %c0_i32 = arith.constant 0 : i32
    %c0_i32_0 = arith.constant 0 : i32
    return %c0_i32, %arg0 : i32, i32
  }
  func.func @transform_1(%arg0: i32) -> (i32, i32) {
    %c0_i32 = arith.constant 0 : i32
    %c0_i32_0 = arith.constant 0 : i32
    %c0_i32_1 = arith.constant 0 : i32
    return %c0_i32, %c0_i32_0 : i32, i32
  }
  func.func @transform_2(%arg0: i32) -> (i32, i32) {
    %c0_i32 = arith.constant 0 : i32
    %c0_i32_0 = arith.constant 0 : i32
    %c0_i32_1 = arith.constant 0 : i32
    return %c0_i32, %c0_i32_0 : i32, i32
  }
  func.func @transform_3(%arg0: i32) -> (i32, i32) {
    %c0_i32 = arith.constant 0 : i32
    %c0_i32_0 = arith.constant 0 : i32
    %c0_i32_1 = arith.constant 0 : i32
    return %c0_i32, %c0_i32_0 : i32, i32
  }
  func.func @transform_4(%arg0: i32) -> (i32, i32) {
    %c0_i32 = arith.constant 0 : i32
    %c0_i32_0 = arith.constant 0 : i32
    %c0_i32_1 = arith.constant 0 : i32
    return %c0_i32, %c0_i32_0 : i32, i32
  }
  func.func @transform_5(%arg0: i32) -> (i32, i32) {
    %c0_i32 = arith.constant 0 : i32
    %c0_i32_0 = arith.constant 0 : i32
    %c0_i32_1 = arith.constant 0 : i32
    return %c0_i32, %c0_i32_0 : i32, i32
  }
  func.func @transform_6(%arg0: i32) -> (i32, i32) {
    %c0_i32 = arith.constant 0 : i32
    %c0_i32_0 = arith.constant 0 : i32
    %c0_i32_1 = arith.constant 0 : i32
    return %c0_i32, %c0_i32_0 : i32, i32
  }
  func.func @transform_7(%arg0: i32) -> (i32, i32) {
    %c0_i32 = arith.constant 0 : i32
    %c0_i32_0 = arith.constant 0 : i32
    %c0_i32_1 = arith.constant 0 : i32
    return %c0_i32, %c0_i32_0 : i32, i32
  }
  func.func @transform_8(%arg0: i32) -> (i32, i32) {
    %c0_i32 = arith.constant 0 : i32
    %c0_i32_0 = arith.constant 0 : i32
    %c0_i32_1 = arith.constant 0 : i32
    return %c0_i32, %c0_i32_0 : i32, i32
  }
  func.func @transform_9(%arg0: i32) -> (i32, i32) {
    %c0_i32 = arith.constant 0 : i32
    %c0_i32_0 = arith.constant 0 : i32
    return %c0_i32, %arg0 : i32, i32
  }
}

</mosaic_0001>

<bundles_post_ra>
// kernel: tpu_custom_call.1
= control target key start
LH: loop header
LB: loop body
LE: loop exit
PB: predicated region body
PF: predicated region fallthrough
CT: control target
= control target key end

     0   :  { %vm133_vm0 = vcmask 1045504   ;;  %vm134_vm1 = vcmask 1046528   ;;  %v547_v2 = vmov 65535   ;;  %v548_v5 = vmov 0   ;;  %s692_s0 = inlined_call_operand.vmem [shape: bf16[13,200], index: 0, kind: input, shape index: {}]   ;;  %s693_s1 = inlined_call_operand.vmem [shape: bf16[64,13], index: 1, kind: input, shape index: {}]   ;;  %s694_s2 = inlined_call_operand.vmem [shape: f32[64,1], index: 2, kind: input, shape index: {}]   ;;  %s695_s3 = inlined_call_operand.vmem [shape: bf16[32,64], index: 3, kind: input, shape index: {}]   ;;  %s696_s4 = inlined_call_operand.vmem [shape: f32[32,1], index: 4, kind: input, shape index: {}]   ;;  %s697_s5 = inlined_call_operand.vmem [shape: bf16[16,32], index: 5, kind: input, shape index: {}]   ;;  %s698_s6 = inlined_call_operand.vmem [shape: f32[16,1], index: 6, kind: input, shape index: {}]   ;;  %s699_s7 = inlined_call_operand.vmem [shape: bf16[4,16], index: 7, kind: input, shape index: {}]   ;;  %s700_s8 = inlined_call_operand.vmem [shape: f32[4,1], index: 8, kind: input, shape index: {}]   ;;  %s701_s9 = inlined_call_operand.hbm [shape: f32[4,200], index: 9, kind: output, shape index: {}]  }
   0x1   :  { %v515_v0 = vld [vmem:[%s692_s0 + $0x4] ss:$8 sps:$4 sm:$0x7f]   ;;  %v517_v1 = vld [vmem:[%s692_s0] ss:$8 sps:$4 sm:$0x7f]   ;;  %175 = vmatprep.mubr.bf16.mxu0 %v548_v5  ;;  %513 = vset.pattern.permute.xlu0 %v548_v5 }
   0x2   :  { %v135_v3 = vsel %vm133_vm0, 4294967295, %v547_v2  ;;  %514 = vset.pattern.permute.xlu1 %v548_v5  ;;  %317 = vmatprep.mubr.bf16.mxu1 %v548_v5  ;;  %v518_v8 = vld [vmem:[%s693_s1] sm:$0xff]   ;;  %v50_v9 = vld [vmem:[%s694_s2 + $0x30] sm:$0xff]  ;;  %vm120_vm2 = vcmask 105472   ;;  %v51_v11 = vld [vmem:[%s694_s2 + $0x38] sm:$0xff] }
   0x3   :  { %v136_v4 = vsel %vm134_vm1, %v135_v3, 0  ;;  %84 = vperm.xlu0 %513, %v50_v9   ;;  %v48_v10 = vld [vmem:[%s694_s2 + $0x20] sm:$0xff]  ;;  %v49_v12 = vld [vmem:[%s694_s2 + $0x28] sm:$0xff]  ;;  %v46_v13 = vld [vmem:[%s694_s2 + $0x10] sm:$0xff] }
   0x4   :  { %v141_v6 = vand.u32 %v515_v0, %v136_v4  ;;  %v138_v7 = vand.u32 %v517_v1, %v136_v4  ;;  %74 = vperm.xlu1 %514, %v48_v10   ;;  %v47_v14 = vld [vmem:[%s694_s2 + $0x18] sm:$0xff] }
   0x6   :  { %157 = vmatprep.subr.bf16.mxu0 %v141_v6 }
   0x7   :  { %158 = vmatpush1.bf16.msra.mxu0 %v138_v7  ;;  %89 = vperm.xlu0 %513, %v51_v11  }
   0x8   :  { %79 = vperm.xlu1 %514, %v49_v12  }
   0xa   :  { %499 = vmatmul.mubr.msk.bf16.vlgmr.msra.gmra.mxu0 %vm120_vm2, %v518_v8 }
   0xb   :  { %185 = vmatprep.mubr.bf16.mxu0 %v548_v5 }
   0xc   :  { %14 = vsyncpa [#allocation3], 0  ;;  %v519_v15 = vld [vmem:[%s693_s1 + $0x8] sm:$0xff]   ;;  %64 = vperm.xlu0 %513, %v46_v13   ;;  %69 = vperm.xlu1 %514, %v47_v14   ;;  %v44_v16 = vld [vmem:[%s694_s2] sm:$0xff]  ;;  %vm278_vm3 = vcmask 523264   ;;  %vm369_vm4 = vcmask 261120  }
   0xd   :  { %v45_v17 = vld [vmem:[%s694_s2 + $0x8] sm:$0xff]  ;;  %v246_v18 = vld [vmem:[%s696_s4 + $0x10] sm:$0xff]  ;;  %v247_v19 = vld [vmem:[%s696_s4 + $0x18] sm:$0xff]  ;;  %vm429_vm5 = vcmask 130048   ;;  %s549_s29 = smov [#allocation2]  }
   0xe   :  { %v520_v20 = vld [vmem:[%s693_s1 + $0x10] sm:$0xff]   ;;  %v244_v21 = vld [vmem:[%s696_s4] sm:$0xff]  ;;  %v245_v22 = vld [vmem:[%s696_s4 + $0x8] sm:$0xff]  ;;  %s485_s30 = sshll.u32 %s549_s29, 4  ;;  %s486_s30 = int_to_ptr.vmem [resolvable:$true] %s485_s30 }
   0xf   :  { %v352_v23 = vld [vmem:[%s698_s6] sm:$0xff]  ;;  %v353_v24 = vld [vmem:[%s698_s6 + $0x8] sm:$0xff]  ;;  %v521_v25 = vld [vmem:[%s693_s1 + $0x18] sm:$0xff]   ;;  %s525_s10 = scalar_lea.vmem %s486_s30, 128  ;;  %p530_p1 = scmp.lt.s32.totalorder %s486_s30, %s486_s30 }
  0x10   :  { %54 = vperm.xlu0 %513, %v44_v16   ;;  %59 = vperm.xlu1 %514, %v45_v17   ;;  %v423_v26 = vld [vmem:[%s700_s8] sm:$0xf]  ;;  %p526_p0 = scmp.ne.s32.totalorder %s486_s30, %s525_s10  ;;  %p531_p2 = scmp.lt.s32.totalorder %s525_s10, %s525_s10 }
  0x12   :  { %500 = vmatmul.mubr.msk.bf16.gmra.mxu0 %vm120_vm2, %v519_v15  ;;  %p532_p3 = por %p531_p2, %p530_p1 }
  0x13   :  { %195 = vmatprep.mubr.bf16.mxu0 %v548_v5 }
  0x14   :  { %260 = vperm.xlu0 %513, %v246_v18   ;;  %265 = vperm.xlu1 %514, %v247_v19   ;;  %p533_p4 = pnand %p532_p3, %p526_p0 }
  0x18   :  { %250 = vperm.xlu0 %513, %v244_v21   ;;  %255 = vperm.xlu1 %514, %v245_v22  }
  0x1a   :  { %501 = vmatmul.mubr.msk.bf16.gmra.mxu0 %vm120_vm2, %v520_v20 }
  0x1b   :  { %205 = vmatprep.mubr.bf16.mxu0 %v548_v5 }
  0x1c   :  { %356 = vperm.xlu0 %513, %v352_v23   ;;  %361 = vperm.xlu1 %514, %v353_v24  }
  0x20   :  { %426 = vperm.xlu0 %513, %v423_v26  }
  0x22   :  { %502 = vmatmul.mubr.msk.bf16.gmra.mxu0 %vm120_vm2, %v521_v25 }
  0x23   :  { %465 = vmatprep.mubr.bf16.mxu0 %v548_v5 }
  0x7e   :  { %v85_v38 = vpop.permute.xlu0 %84 }
  0x7f   :  { %v75_v36 = vpop.permute.xlu1 %74 }
  0x82   :  { %v90_v43 = vpop.permute.xlu0 %89 }
  0x83   :  { %v80_v41 = vpop.permute.xlu1 %79 }
  0x87   :  { %v70_v49 = vpop.permute.xlu1 %69  ;;  %v65_v54 = vpop.permute.xlu0 %64 }
  0x8b   :  { %v60_v2 = vpop.permute.xlu1 %59  ;;  %v55_v10 = vpop.permute.xlu0 %54 }
  0xca   :  { %v177_v27 = vpop.f32.mrf.mxu0 }
  0xcb   :  { %v178_v20 = vadd.f32 %v177_v27, %v55_v10  ;;  %v523_v27 = vld [vmem:[%s695_s3 + $0x8] sm:$0xff]  }
  0xcc   :  { %v179_v28 = vpop.f32.mrf.mxu0 }
  0xcd   :  { %v180_v13 = vadd.f32 %v179_v28, %v55_v10  ;;  %v216_v26 = vmax.f32 %v178_v20, 0.0  ;;  %v522_v28 = vld [vmem:[%s695_s3] sm:$0xff]  }
  0xce   :  { %v181_v29 = vpop.f32.mrf.mxu0 }
  0xcf   :  { %v182_v15 = vadd.f32 %v181_v29, %v60_v2  ;;  %v217_v22 = vmax.f32 %v180_v13, 0.0 }
  0xd0   :  { %v183_v30 = vpop.f32.mrf.mxu0 }
  0xd1   :  { %v184_v7 = vadd.f32 %v183_v30, %v60_v2  ;;  %v218_v23 = vmax.f32 %v182_v15, 0.0  ;;  %v422_v15 = vld [vmem:[%s699_s7] sm:$0x3] }
  0xd2   :  { %v187_v31 = vpop.f32.mrf.mxu0 }
  0xd3   :  { %v188_v11 = vadd.f32 %v187_v31, %v65_v54  ;;  %v219_v18 = vmax.f32 %v184_v7, 0.0  ;;  %v232_v30 = vpack.c.bf16 %v218_v23, %v216_v26 }
  0xd4   :  { %v189_v32 = vpop.f32.mrf.mxu0 }
  0xd5   :  { %v190_v63 = vadd.f32 %v189_v32, %v65_v54  ;;  %v220_v21 = vmax.f32 %v188_v11, 0.0  ;;  %v233_v25 = vpack.c.bf16 %v219_v18, %v217_v22 }
  0xd6   :  { %v191_v33 = vpop.f32.mrf.mxu0 }
  0xd7   :  { %v192_v3 = vadd.f32 %v191_v33, %v70_v49  ;;  %v221_v14 = vmax.f32 %v190_v63, 0.0  ;;  %v266_v33 = vpop.permute.xlu1 %265 }
  0xd8   :  { %v193_v34 = vpop.f32.mrf.mxu0 }
  0xd9   :  { %v194_v57 = vadd.f32 %v193_v34, %v70_v49  ;;  %v222_v16 = vmax.f32 %v192_v3, 0.0 }
  0xda   :  { %v197_v35 = vpop.f32.mrf.mxu0 }
  0xdb   :  { %v198_v61 = vadd.f32 %v197_v35, %v75_v36  ;;  %v223_v8 = vmax.f32 %v194_v57, 0.0  ;;  %v234_v24 = vpack.c.bf16 %v222_v16, %v220_v21  ;;  %v261_v35 = vpop.permute.xlu0 %260 }
  0xdc   :  { %v199_v37 = vpop.f32.mrf.mxu0 }
  0xdd   :  { %v200_v52 = vadd.f32 %v199_v37, %v75_v36  ;;  %v224_v12 = vmax.f32 %v198_v61, 0.0  ;;  %v235_v19 = vpack.c.bf16 %v223_v8, %v221_v14  ;;  %v524_v61 = vld [vmem:[%s697_s5] sm:$0xff]  }
  0xde   :  { %v201_v39 = vpop.f32.mrf.mxu0 }
  0xdf   :  { %v202_v55 = vadd.f32 %v201_v39, %v80_v41  ;;  %v225_v0 = vmax.f32 %v200_v52, 0.0 }
  0xe0   :  { %v203_v40 = vpop.f32.mrf.mxu0 }
  0xe1   :  { %v204_v46 = vadd.f32 %v203_v40, %v80_v41  ;;  %v226_v4 = vmax.f32 %v202_v55, 0.0 }
  0xe2   :  { %v207_v42 = vpop.f32.mrf.mxu0 }
  0xe3   :  { %v208_v50 = vadd.f32 %v207_v42, %v85_v38  ;;  %v227_v58 = vmax.f32 %v204_v46, 0.0  ;;  %v236_v17 = vpack.c.bf16 %v226_v4, %v224_v12 }
  0xe4   :  { %v209_v44 = vpop.f32.mrf.mxu0 }
  0xe5   :  { %v210_v47 = vadd.f32 %v209_v44, %v85_v38  ;;  %v228_v62 = vmax.f32 %v208_v50, 0.0  ;;  %v237_v9 = vpack.c.bf16 %v227_v58, %v225_v0  ;;  %v256_v38 = vpop.permute.xlu1 %255 }
  0xe6   :  { %v211_v45 = vpop.f32.mrf.mxu0 }
  0xe7   :  { %v212_v48 = vadd.f32 %v211_v45, %v90_v43  ;;  %v229_v59 = vmax.f32 %v210_v47, 0.0 }
  0xe8   :  { %v213_v51 = vpop.f32.mrf.mxu0 }
  0xe9   :  { %v214_v53 = vadd.f32 %v213_v51, %v90_v43  ;;  %v230_v56 = vmax.f32 %v212_v48, 0.0  ;;  %v251_v43 = vpop.permute.xlu0 %250 }
  0xeb   :  { %v231_v60 = vmax.f32 %v214_v53, 0.0  ;;  %v238_v6 = vpack.c.bf16 %v230_v56, %v228_v62 }
  0xed   :  { %v239_v1 = vpack.c.bf16 %v231_v60, %v229_v59  ;;  %v357_v0 = vpop.permute.xlu0 %356 }
  0xef   :  { %293 = vmatprep.subr.bf16.mxu1 %v239_v1  ;;  %v362_v1 = vpop.permute.xlu1 %361 }
  0xf0   :  { %294 = vmatpush1.bf16.msra.mxu1 %v238_v6 }
  0xf1   :  { %295 = vmatprep.subr.bf16.mxu1 %v237_v9 }
  0xf4   :  { %296 = vmatpush1.bf16.msra.mxu1 %v236_v17  ;;  %v427_v17 = vpop.permute.xlu0 %426 }
  0xf5   :  { %297 = vmatprep.subr.bf16.mxu1 %v235_v19 }
  0xf8   :  { %298 = vmatpush1.bf16.msra.mxu1 %v234_v24 }
  0xf9   :  { %299 = vmatprep.subr.bf16.mxu1 %v233_v25 }
  0xfc   :  { %300 = vmatpush1.bf16.msra.mxu1 %v232_v30 }
  0xff   :  { %505 = vmatmul.mubr.msk.bf16.vlgmr.msra.gmra.mxu1 %vm278_vm3, %v522_v28 }
 0x100   :  { %327 = vmatprep.mubr.bf16.mxu1 %v548_v5 }
 0x107   :  { %506 = vmatmul.mubr.msk.bf16.gmra.mxu1 %vm278_vm3, %v523_v27 }
 0x108   :  { %405 = vmatprep.mubr.bf16.mxu1 %v548_v5 }
 0x1bf   :  { %v319_v29 = vpop.f32.mrf.mxu1 }
 0x1c0   :  { %v320_v52 = vadd.f32 %v319_v29, %v251_v43 }
 0x1c1   :  { %v321_v31 = vpop.f32.mrf.mxu1 }
 0x1c2   :  { %v322_v46 = vadd.f32 %v321_v31, %v251_v43  ;;  %v338_v59 = vmax.f32 %v320_v52, 0.0 }
 0x1c3   :  { %v323_v32 = vpop.f32.mrf.mxu1 }
 0x1c4   :  { %v324_v48 = vadd.f32 %v323_v32, %v256_v38  ;;  %v339_v54 = vmax.f32 %v322_v46, 0.0 }
 0x1c5   :  { %v325_v34 = vpop.f32.mrf.mxu1 }
 0x1c6   :  { %v326_v40 = vadd.f32 %v325_v34, %v256_v38  ;;  %v340_v56 = vmax.f32 %v324_v48, 0.0 }
 0x1c7   :  { %v329_v36 = vpop.f32.mrf.mxu1 }
 0x1c8   :  { %v330_v44 = vadd.f32 %v329_v36, %v261_v35  ;;  %v341_v49 = vmax.f32 %v326_v40, 0.0  ;;  %v346_v60 = vpack.c.bf16 %v340_v56, %v338_v59 }
 0x1c9   :  { %v331_v37 = vpop.f32.mrf.mxu1 }
 0x1ca   :  { %v332_v41 = vadd.f32 %v331_v37, %v261_v35  ;;  %v342_v53 = vmax.f32 %v330_v44, 0.0  ;;  %v347_v58 = vpack.c.bf16 %v341_v49, %v339_v54 }
 0x1cb   :  { %v333_v39 = vpop.f32.mrf.mxu1 }
 0x1cc   :  { %v334_v42 = vadd.f32 %v333_v39, %v266_v33  ;;  %v343_v50 = vmax.f32 %v332_v41, 0.0 }
 0x1cd   :  { %v335_v45 = vpop.f32.mrf.mxu1 }
 0x1ce   :  { %v336_v47 = vadd.f32 %v335_v45, %v266_v33  ;;  %v344_v5 = vmax.f32 %v334_v42, 0.0 }
 0x1d0   :  { %v345_v51 = vmax.f32 %v336_v47, 0.0  ;;  %v348_v57 = vpack.c.bf16 %v344_v5, %v342_v53 }
 0x1d2   :  { %v349_v55 = vpack.c.bf16 %v345_v51, %v343_v50 }
 0x1d4   :  { %385 = vmatprep.subr.bf16.mxu1 %v349_v55 }
 0x1d5   :  { %386 = vmatpush1.bf16.msra.mxu1 %v348_v57 }
 0x1d6   :  { %387 = vmatprep.subr.bf16.mxu1 %v347_v58 }
 0x1d9   :  { %388 = vmatpush1.bf16.msra.mxu1 %v346_v60 }
 0x1dc   :  { %508 = vmatmul.mubr.msk.bf16.vlgmr.msra.gmra.mxu1 %vm369_vm4, %v524_v61 }
 0x29c   :  { %v407_v62 = vpop.f32.mrf.mxu1 }
 0x29d   :  { %v408_v6 = vadd.f32 %v407_v62, %v357_v0 }
 0x29e   :  { %v409_v63 = vpop.f32.mrf.mxu1 }
 0x29f   :  { %v410_v3 = vadd.f32 %v409_v63, %v357_v0  ;;  %v416_v12 = vmax.f32 %v408_v6, 0.0 }
 0x2a0   :  { %v411_v2 = vpop.f32.mrf.mxu1 }
 0x2a1   :  { %v412_v4 = vadd.f32 %v411_v2, %v362_v1  ;;  %v417_v10 = vmax.f32 %v410_v3, 0.0 }
 0x2a2   :  { %v413_v7 = vpop.f32.mrf.mxu1 }
 0x2a3   :  { %v414_v8 = vadd.f32 %v413_v7, %v362_v1  ;;  %v418_v9 = vmax.f32 %v412_v4, 0.0 }
 0x2a5   :  { %v419_v11 = vmax.f32 %v414_v8, 0.0  ;;  %v420_v14 = vpack.c.bf16 %v418_v9, %v416_v12 }
 0x2a7   :  { %v421_v13 = vpack.c.bf16 %v419_v11, %v417_v10 }
 0x2a9   :  { %447 = vmatprep.subr.bf16.mxu0 %v421_v13 }
 0x2aa   :  { %448 = vmatpush1.bf16.msra.mxu0 %v420_v14 }
 0x2ad   :  { %509 = vmatmul.mubr.msk.bf16.vlgmr.msra.gmra.mxu0 %vm429_vm5, %v422_v15 }
 0x36d   :  { %v467_v16 = vpop.f32.mrf.mxu0 }
 0x36e   :  { %v468_v19 = vadd.f32 %v467_v16, %v427_v17 }
 0x36f   :  { %v469_v18 = vpop.f32.mrf.mxu0 }
 0x370   :  { %v470_v20 = vadd.f32 %v469_v18, %v427_v17 }
 0x371   :  { %v471_v21 = vpop.f32.mrf.mxu0 }
 0x372   :  { %v476_v22 = vcombine.low %v468_v19, %v470_v20 }
 0x373   :  { %v472_v23 = vpop.f32.mrf.mxu0 }
 0x374   :  { %478 = vst [vmem:[#allocation2] sm:$0xff] %v476_v22 }
 0x375   :  { %536 = shalt.err (!%p533_p4)
}
 0x376   :  { %488 = dma.vmem_to_hbm [thread:$0]  %s486_s30, 128, %s701_s9, [#allocation3]  }
 0x377   :  { %545 = dma.done.wait [#allocation3], 128  }
 0x378   :  { %546 = vsyncadd [#allocation3], 4294967168 }
 0x379   :  { %492 = vsyncpa [#allocation3], 1 }

</bundles_post_ra>
